<compile_context>
chip_gen: v5e
topology: v5e:2x2
jax: 0.10.0
libtpu: 0.0.40
codegen_flags: <defaults>
</compile_context>

<pallas_src>
import functools

import jax
import jax.numpy as jnp
from jax import lax
from jax.experimental import pallas as pl
from jax.experimental.pallas import tpu as pltpu


SUB = 8        # sublanes per tile
LANE = 128     # lanes per tile
CHUNK = SUB * LANE   # samples per (8, 128) tile


def _cox_loss_kernel(se_ref, out_ref, *, n_real: int, n_chunks: int):
    """se_ref: (2*n_chunks, 8, 128) f32.  Tiles [0, C) are sorted scores, tiles
    [C, 2C) are the matching event indicators; each tile holds 1024 consecutive
    (sorted) samples in row-major order, zero padded past n_real."""
    # Static per-tile indices: only two (8,128) int32 vregs stay live; per-tile
    # validity masks are derived locally where consumed.
    ridx = lax.broadcasted_iota(jnp.int32, (SUB, LANE), 0)
    flat = ridx * LANE + lax.broadcasted_iota(jnp.int32, (SUB, LANE), 1)

    neg_cap = jnp.float32(jnp.finfo(jnp.float32).min)

    # ---- pass 1: max over the real (unpadded) samples (numerical shift) -----
    m = neg_cap
    for c in range(n_chunks):
        valid = flat < (n_real - c * CHUNK)
        m = jnp.maximum(m, jnp.max(jnp.where(valid, se_ref[c], neg_cap)))

    # Fixed upper-triangular 0/1 matrix (row j contributes to lane l iff j <= l):
    # prefix-sum-along-lanes becomes one MXU matmul per bf16 half.
    ut = jnp.where(
        lax.broadcasted_iota(jnp.int32, (LANE, LANE), 0)
        <= lax.broadcasted_iota(jnp.int32, (LANE, LANE), 1),
        1.0, 0.0,
    ).astype(jnp.bfloat16)

    carry = jnp.float32(0.0)   # total exp mass of all preceding tiles
    acc = jnp.float32(0.0)     # running sum of per-sample losses
    # TODO(synk): if n ever reaches the multi-million range, replace this static
    # unrolled tile loop with a grid over tiles ("arbitrary" axis) + SMEM carry.
    for c in range(n_chunks):
        valid = flat < (n_real - c * CHUNK)
        s_c = se_ref[c] - m                         # shifted scores, (8,128)
        e_c = se_ref[n_chunks + c]                  # event indicators
        ex = jnp.exp(jnp.where(valid, s_c, -jnp.inf))   # exactly 0 on padding

        # Lane-wise inclusive prefix sum on the MXU: split ex into bf16 hi/lo
        # halves so both matmuls use the native bf16 MXU path while the summed
        # result keeps ~f32 accuracy for the cumulative sums.
        ex_hi = ex.astype(jnp.bfloat16)
        ex_lo = (ex - ex_hi.astype(jnp.float32)).astype(jnp.bfloat16)
        lane_pfx = (
            jnp.dot(ex_hi, ut, preferred_element_type=jnp.float32)
            + jnp.dot(ex_lo, ut, preferred_element_type=jnp.float32)
        )

        # Exclusive cross-row carry inside the tile: 3-step Hillis-Steele scan
        # on a single (8,128) vreg (sublane rolls -> XLU slot, VPU adds).
        row_tot1 = jnp.sum(ex, axis=1, keepdims=True)          # (8, 1)
        row_tot = jnp.broadcast_to(row_tot1, (SUB, LANE))       # one vreg
        rscan = row_tot
        d = 1
        while d < SUB:
            rolled = pltpu.roll(rscan, shift=d, axis=0)          # rolled[r] = rscan[r-d]
            rscan = rscan + jnp.where(ridx >= d, rolled, 0.0)
            d *= 2
        row_carry = rscan - row_tot                              # exclusive over rows

        # Inclusive cumulative sum of exp(scores) in global flat (sorted) order.
        cums = lane_pfx + row_carry + carry
        carry = carry + jnp.sum(row_tot1)

        loss = jnp.where(valid, -(s_c - jnp.log(cums)) * e_c, 0.0)
        acc = acc + jnp.sum(loss)

    out_ref[0] = acc / jnp.float32(n_real)


@jax.jit
def cox_baseline_loss(scores, truth):
    """scores: (n, 1) float tensor; truth: (n, 2) float tensor with columns (E, T).

    Returns a scalar float32 = mean Cox loss (matches BaselineLoss.forward).
    """
    scores = jnp.asarray(scores, jnp.float32)
    truth = jnp.asarray(truth, jnp.float32)
    n = scores.shape[0]

    s = jnp.squeeze(scores, axis=1)     # (n,)
    events = truth[:, 0]                # E
    times = truth[:, 1]                 # T

    # TODO(synk): the data-dependent stable sort (Python `sorted(key=-T)` in the
    # reference) stays as XLA glue; everything downstream is a single packed
    # gather + pad + reshape feeding one pallas_call.
    order = jnp.argsort(-times, stable=True)

    se = jnp.stack([s, events], axis=0)[:, order]        # (2, n): one gather
    n_chunks = max(1, -(-n // CHUNK))
    pad = n_chunks * CHUNK - n
    se = jnp.pad(se, ((0, 0), (0, pad)))                 # zero-pad both rows
    # (2*C, 8, 128): tiles 0..C-1 = scores, tiles C..2C-1 = events; each tile is
    # the row-major flat layout of 1024 consecutive sorted samples.
    se = se.reshape(2 * n_chunks, SUB, LANE)

    kernel = functools.partial(_cox_loss_kernel, n_real=n, n_chunks=n_chunks)
    out = pl.pallas_call(
        kernel,
        out_shape=jax.ShapeDtypeStruct((1,), jnp.float32),
        in_specs=[pl.BlockSpec((2 * n_chunks, SUB, LANE), lambda: (0, 0, 0))],
        out_specs=pl.BlockSpec(memory_space=pltpu.MemorySpace.SMEM),
    )(se)
    # TODO(synk): for batched/multi-client evaluation on v7x, add a leading batch
    # grid axis with dimension_semantics=("parallel",) to use both TensorCores.
    return out[0]


@jax.jit
def _reference_loss(scores, truth):
    """Pure-JAX replica of the PyTorch forward, for a sanity check."""
    s = jnp.squeeze(scores.astype(jnp.float32), axis=1)
    t = truth.astype(jnp.float32)
    order = jnp.argsort(-t[:, 1], stable=True)
    s = s[order]
    e = t[:, 0][order]
    s_ = s - jnp.max(s)
    loss = -(s_ - jnp.log(jnp.cumsum(jnp.exp(s_)))) * e
    return jnp.mean(loss)


def _make_inputs(key, n):
    k1, k2, k3 = jax.random.split(key, 3)
    scores = jax.random.normal(k1, (n, 1), dtype=jnp.float32)
    events = jax.random.bernoulli(k2, p=0.6, shape=(n,)).astype(jnp.float32)
    times = jax.random.uniform(k3, (n,), minval=0.1, maxval=10.0, dtype=jnp.float32)
    truth = jnp.stack([events, times], axis=1)
    return scores, truth


if __name__ == "__main__":
    key = jax.random.PRNGKey(0)
    k_small, k_large = jax.random.split(key, 2)

    # Tolerance covers the bf16-hi/lo MXU prefix sum (~1e-5 abs) plus the
    # tree-vs-sequential reassociation of the cumulative sums.
    # Primary small case, consistent with the module's (n_samples,1)/(n_samples,2) inputs.
    scores, truth = _make_inputs(k_small, 8)
    out = jax.block_until_ready(cox_baseline_loss(scores, truth))
    ref = jax.block_until_ready(_reference_loss(scores, truth))
    assert jnp.allclose(out, ref, atol=1e-4, rtol=1e-4), (out, ref)

    # Secondary case exercising padding + the cross-row carry path.
    scores2, truth2 = _make_inputs(k_large, 300)
    out2 = jax.block_until_ready(cox_baseline_loss(scores2, truth2))
    ref2 = jax.block_until_ready(_reference_loss(scores2, truth2))
    assert jnp.allclose(out2, ref2, atol=1e-4, rtol=1e-4), (out2, ref2)

    print("KERNEL_OK")
</pallas_src>

<mosaic_0001>
module attributes {stable_mosaic.version = 11 : i64} {
  func.func @_cox_loss_kernel(%arg0: memref<2x8x128xf32, #tpu.memory_space<vmem>>, %arg1: memref<1xf32, #tpu.memory_space<smem>>) attributes {dimension_semantics = [], scalar_prefetch = 0 : i64, scratch_operands = 0 : i64, tpu.core_type = #tpu.core_type<tc>} {
    %0 = tpu.iota {dimensions = array<i32: 0>} : vector<8x128xi32>
    %c128_i32 = arith.constant 128 : i32
    %1 = vector.broadcast %c128_i32 : i32 to vector<8x128xi32>
    %2 = arith.muli %0, %1 : vector<8x128xi32>
    %3 = tpu.iota {dimensions = array<i32: 1>} : vector<8x128xi32>
    %4 = arith.addi %2, %3 : vector<8x128xi32>
    %c8_i32 = arith.constant 8 : i32
    %5 = vector.broadcast %c8_i32 : i32 to vector<8x128xi32>
    %6 = arith.cmpi slt, %4, %5 : vector<8x128xi32>
    %c0 = arith.constant 0 : index
    %c0_0 = arith.constant 0 : index
    %c0_1 = arith.constant 0 : index
    %7 = vector.load %arg0[%c0, %c0_0, %c0_1] : memref<2x8x128xf32, #tpu.memory_space<vmem>>, vector<1x8x128xf32>
    %8 = vector.shape_cast %7 : vector<1x8x128xf32> to vector<8x128xf32>
    %cst = arith.constant -3.40282347E+38 : f32
    %9 = vector.broadcast %cst : f32 to vector<8x128xf32>
    %10 = arith.select %6, %8, %9 : vector<8x128xi1>, vector<8x128xf32>
    %11 = vector.shape_cast %10 : vector<8x128xf32> to vector<1x8x128xf32>
    %cst_2 = arith.constant dense<0xFF800000> : vector<1xf32>
    %12 = vector.multi_reduction <maximumf>, %11, %cst_2 [1, 2] : vector<1x8x128xf32> to vector<1xf32>
    %13 = vector.shape_cast %12 : vector<1xf32> to vector<1x1x1xf32>
    %14 = vector.extract %13[0, 0, 0] : f32 from vector<1x1x1xf32>
    %cst_3 = arith.constant -3.40282347E+38 : f32
    %15 = arith.maximumf %cst_3, %14 : f32
    %16 = tpu.iota {dimensions = array<i32: 0>} : vector<128x128xi32>
    %17 = tpu.iota {dimensions = array<i32: 1>} : vector<128x128xi32>
    %18 = arith.cmpi sle, %16, %17 : vector<128x128xi32>
    %cst_4 = arith.constant 1.000000e+00 : f32
    %cst_5 = arith.constant 0.000000e+00 : f32
    %19 = vector.broadcast %cst_4 : f32 to vector<128x128xf32>
    %20 = vector.broadcast %cst_5 : f32 to vector<128x128xf32>
    %21 = arith.select %18, %19, %20 : vector<128x128xi1>, vector<128x128xf32>
    %22 = arith.truncf %21 : vector<128x128xf32> to vector<128x128xbf16>
    %c8_i32_6 = arith.constant 8 : i32
    %23 = vector.broadcast %c8_i32_6 : i32 to vector<8x128xi32>
    %24 = arith.cmpi slt, %4, %23 : vector<8x128xi32>
    %c0_7 = arith.constant 0 : index
    %c0_8 = arith.constant 0 : index
    %c0_9 = arith.constant 0 : index
    %25 = vector.load %arg0[%c0_7, %c0_8, %c0_9] : memref<2x8x128xf32, #tpu.memory_space<vmem>>, vector<1x8x128xf32>
    %26 = vector.shape_cast %25 : vector<1x8x128xf32> to vector<8x128xf32>
    %27 = vector.broadcast %15 : f32 to vector<8x128xf32>
    %28 = arith.subf %26, %27 : vector<8x128xf32>
    %c1 = arith.constant 1 : index
    %c0_10 = arith.constant 0 : index
    %c0_11 = arith.constant 0 : index
    %29 = vector.load %arg0[%c1, %c0_10, %c0_11] : memref<2x8x128xf32, #tpu.memory_space<vmem>>, vector<1x8x128xf32>
    %30 = vector.shape_cast %29 : vector<1x8x128xf32> to vector<8x128xf32>
    %cst_12 = arith.constant 0xFF800000 : f32
    %31 = vector.broadcast %cst_12 : f32 to vector<8x128xf32>
    %32 = arith.select %24, %28, %31 : vector<8x128xi1>, vector<8x128xf32>
    %33 = math.exp %32 : vector<8x128xf32>
    %34 = arith.truncf %33 : vector<8x128xf32> to vector<8x128xbf16>
    %35 = arith.extf %34 : vector<8x128xbf16> to vector<8x128xf32>
    %36 = arith.subf %33, %35 : vector<8x128xf32>
    %37 = arith.truncf %36 : vector<8x128xf32> to vector<8x128xbf16>
    %cst_13 = arith.constant dense<0.000000e+00> : vector<8x128xf32>
    %38 = tpu.matmul %34, %22, %cst_13 {dimension_numbers = #tpu.dot_dimension_numbers<[1], [0], [0], [1], [0, 0, 1, 1], [], []>} : vector<8x128xbf16>, vector<128x128xbf16>, vector<8x128xf32> -> vector<8x128xf32>
    %cst_14 = arith.constant dense<0.000000e+00> : vector<8x128xf32>
    %39 = tpu.matmul %37, %22, %cst_14 {dimension_numbers = #tpu.dot_dimension_numbers<[1], [0], [0], [1], [0, 0, 1, 1], [], []>} : vector<8x128xbf16>, vector<128x128xbf16>, vector<8x128xf32> -> vector<8x128xf32>
    %40 = arith.addf %38, %39 : vector<8x128xf32>
    %cst_15 = arith.constant dense<0.000000e+00> : vector<8xf32>
    %41 = vector.multi_reduction <add>, %33, %cst_15 [1] : vector<8x128xf32> to vector<8xf32>
    %42 = vector.shape_cast %41 : vector<8xf32> to vector<8x1xf32>
    %43 = vector.shape_cast %42 : vector<8x1xf32> to vector<8x1xf32>
    %44 = vector.broadcast %43 : vector<8x1xf32> to vector<8x128xf32>
    %c1_i32 = arith.constant 1 : i32
    %45 = tpu.dynamic_rotate %44 by %c1_i32 dim 0 : vector<8x128xf32>, i32 -> vector<8x128xf32>
    %c1_i32_16 = arith.constant 1 : i32
    %46 = vector.broadcast %c1_i32_16 : i32 to vector<8x128xi32>
    %47 = arith.cmpi sge, %0, %46 : vector<8x128xi32>
    %cst_17 = arith.constant 0.000000e+00 : f32
    %48 = vector.broadcast %cst_17 : f32 to vector<8x128xf32>
    %49 = arith.select %47, %45, %48 : vector<8x128xi1>, vector<8x128xf32>
    %50 = arith.addf %44, %49 : vector<8x128xf32>
    %c2_i32 = arith.constant 2 : i32
    %51 = tpu.dynamic_rotate %50 by %c2_i32 dim 0 : vector<8x128xf32>, i32 -> vector<8x128xf32>
    %c2_i32_18 = arith.constant 2 : i32
    %52 = vector.broadcast %c2_i32_18 : i32 to vector<8x128xi32>
    %53 = arith.cmpi sge, %0, %52 : vector<8x128xi32>
    %cst_19 = arith.constant 0.000000e+00 : f32
    %54 = vector.broadcast %cst_19 : f32 to vector<8x128xf32>
    %55 = arith.select %53, %51, %54 : vector<8x128xi1>, vector<8x128xf32>
    %56 = arith.addf %50, %55 : vector<8x128xf32>
    %c4_i32 = arith.constant 4 : i32
    %57 = tpu.dynamic_rotate %56 by %c4_i32 dim 0 : vector<8x128xf32>, i32 -> vector<8x128xf32>
    %c4_i32_20 = arith.constant 4 : i32
    %58 = vector.broadcast %c4_i32_20 : i32 to vector<8x128xi32>
    %59 = arith.cmpi sge, %0, %58 : vector<8x128xi32>
    %cst_21 = arith.constant 0.000000e+00 : f32
    %60 = vector.broadcast %cst_21 : f32 to vector<8x128xf32>
    %61 = arith.select %59, %57, %60 : vector<8x128xi1>, vector<8x128xf32>
    %62 = arith.addf %56, %61 : vector<8x128xf32>
    %63 = arith.subf %62, %44 : vector<8x128xf32>
    %64 = arith.addf %40, %63 : vector<8x128xf32>
    %cst_22 = arith.constant 0.000000e+00 : f32
    %65 = vector.broadcast %cst_22 : f32 to vector<8x128xf32>
    %66 = arith.addf %64, %65 : vector<8x128xf32>
    %67 = math.log %66 : vector<8x128xf32>
    %68 = arith.subf %28, %67 : vector<8x128xf32>
    %cst_23 = arith.constant 0.000000e+00 : f32
    %69 = vector.broadcast %cst_23 : f32 to vector<8x128xf32>
    %70 = arith.subf %69, %68 : vector<8x128xf32>
    %71 = arith.mulf %70, %30 : vector<8x128xf32>
    %cst_24 = arith.constant 0.000000e+00 : f32
    %72 = vector.broadcast %cst_24 : f32 to vector<8x128xf32>
    %73 = arith.select %24, %71, %72 : vector<8x128xi1>, vector<8x128xf32>
    %74 = vector.shape_cast %73 : vector<8x128xf32> to vector<1x8x128xf32>
    %cst_25 = arith.constant dense<0.000000e+00> : vector<1xf32>
    %75 = vector.multi_reduction <add>, %74, %cst_25 [1, 2] : vector<1x8x128xf32> to vector<1xf32>
    %76 = vector.shape_cast %75 : vector<1xf32> to vector<1x1x1xf32>
    %77 = vector.extract %76[0, 0, 0] : f32 from vector<1x1x1xf32>
    %cst_26 = arith.constant 0.000000e+00 : f32
    %78 = arith.addf %cst_26, %77 : f32
    %cst_27 = arith.constant 8.000000e+00 : f32
    %79 = arith.divf %78, %cst_27 : f32
    %c0_28 = arith.constant 0 : index
    %80 = memref.load %arg1[%c0_28] : memref<1xf32, #tpu.memory_space<smem>>
    memref.store %79, %arg1[%c0_28] : memref<1xf32, #tpu.memory_space<smem>>
    return
  }
}

</mosaic_0001>

<bundles_post_ra>
// kernel: cox_baseline_loss.1
= control target key start
LH: loop header
LB: loop body
LE: loop exit
PB: predicated region body
PF: predicated region fallthrough
CT: control target
= control target key end

     0   :  { %v9_v0 = vlaneseq  ;;  %s319_s0 = inlined_call_operand.vmem [shape: f32[2,8,128], index: 0, kind: input, shape index: {}]   ;;  %s320_s1 = inlined_call_operand.hbm [shape: f32[1], index: 1, kind: output, shape index: {}]  }
   0x1   :  { %6 = vsyncpa [#allocation3], 0  ;;  %v267_v5 = vld [vmem:[%s319_s0] sm:$0xff]  ;;  %v242_v13 = vmov 1.0|1.0   ;;  %v179_v59 = vld [vmem:[%s319_s0 + $0x8] sm:$0xff] }
   0x2   :  { %v256_v1 = vshrl.u32 %v9_v0, 7  ;;  %v258_v2 = vand.u32 127, %v9_v0  ;;  %s243_s9 = smov -3.4028235e+38   ;;  %v244_v63 = vmov 8.0   ;;  %s169_s14 = sshll.u32 %s320_s1, 4  ;;  %s170_s14 = int_to_ptr.hbm [resolvable:$true] %s169_s14 }
   0x3   :  { %s245_s18 = smov [#allocation2]  }
   0x4   :  { %v11_v3 = vmul.u32 128, %v256_v1  ;;  %v41_v7 = vadd.s32 112, %v256_v1  ;;  %v42_v8 = vadd.s32 120, %v256_v1  ;;  %v39_v9 = vadd.s32 96, %v256_v1 }
   0x5   :  { %v40_v10 = vadd.s32 104, %v256_v1  ;;  %v37_v11 = vadd.s32 80, %v256_v1  ;;  %v38_v12 = vadd.s32 88, %v256_v1  ;;  %v35_v14 = vadd.s32 64, %v256_v1 }
   0x6   :  { %v262_v4 = vadd.s32 %v258_v2, %v11_v3  ;;  %vm57_vm1 = vcmp.le.s32.totalorder %v41_v7, %v258_v2  ;;  %vm58_vm2 = vcmp.le.s32.totalorder %v42_v8, %v258_v2  ;;  %vm55_vm3 = vcmp.le.s32.totalorder %v39_v9, %v258_v2 }
   0x7   :  { %vm180_vm4 = vmpackc.low %vm58_vm2, %vm57_vm1  ;;  %vm56_vm5 = vcmp.le.s32.totalorder %v40_v10, %v258_v2  ;;  %vm53_vm7 = vcmp.le.s32.totalorder %v37_v11, %v258_v2  ;;  %vm54_vm8 = vcmp.le.s32.totalorder %v38_v12, %v258_v2  ;;  %v36_v15 = vadd.s32 72, %v256_v1 }
   0x8   :  { %vm15_vm0 = vcmp.lt.s32.totalorder %v262_v4, 8  ;;  %197 = vmatpush.bf16.msk.msra.mxu1 %vm180_vm4, %v242_v13  ;;  %181 = vmatpush.bf16.msk.msra.mxu0 %vm180_vm4, %v242_v13  ;;  %vm182_vm6 = vmpackc.low %vm56_vm5, %vm55_vm3  ;;  %vm51_vm10 = vcmp.le.s32.totalorder %v35_v14, %v258_v2  ;;  %v33_v23 = vadd.s32 48, %v256_v1  ;;  %v34_v24 = vadd.s32 56, %v256_v1 }
   0x9   :  { %v17_v6 = vsel %vm15_vm0, %v267_v5, -3.4028235e+38  ;;  %vm184_vm9 = vmpackc.low %vm54_vm8, %vm53_vm7  ;;  %vm52_vm11 = vcmp.le.s32.totalorder %v36_v15, %v258_v2  ;;  %v31_v25 = vadd.s32 32, %v256_v1  ;;  %v32_v26 = vadd.s32 40, %v256_v1 }
   0xa   :  { %18 = vmax.xlane.f32.xlu0 %v17_v6  ;;  %vm186_vm12 = vmpackc.low %vm52_vm11, %vm51_vm10  ;;  %vm49_vm13 = vcmp.le.s32.totalorder %v33_v23, %v258_v2  ;;  %vm50_vm14 = vcmp.le.s32.totalorder %v34_v24, %v258_v2  ;;  %v29_v27 = vadd.s32 16, %v256_v1  ;;  %v30_v28 = vadd.s32 24, %v256_v1 }
   0xb   :  { %vm188_vm15 = vmpackc.low %vm50_vm14, %vm49_vm13  ;;  %vm47_vm1 = vcmp.le.s32.totalorder %v31_v25, %v258_v2  ;;  %vm48_vm2 = vcmp.le.s32.totalorder %v32_v26, %v258_v2  ;;  %v28_v29 = vadd.s32 8, %v256_v1  ;;  %vm123_vm10 = vcmp.ge.s32.totalorder %v256_v1, 1 }
   0xc   :  { %199 = vmatpush.bf16.msk.msra.mxu1 %vm182_vm6, %v242_v13  ;;  %183 = vmatpush.bf16.msk.msra.mxu0 %vm182_vm6, %v242_v13  ;;  %vm190_vm3 = vmpackc.low %vm48_vm2, %vm47_vm1  ;;  %vm45_vm4 = vcmp.le.s32.totalorder %v29_v27, %v258_v2  ;;  %vm46_vm5 = vcmp.le.s32.totalorder %v30_v28, %v258_v2  ;;  %vm43_vm6 = vcmp.le.s32.totalorder %v256_v1, %v258_v2  ;;  %vm127_vm11 = vcmp.ge.s32.totalorder %v256_v1, 2 }
   0xd   :  { %vm192_vm7 = vmpackc.low %vm46_vm5, %vm45_vm4  ;;  %vm44_vm8 = vcmp.le.s32.totalorder %v28_v29, %v258_v2 }
  0x10   :  { %201 = vmatpush.bf16.msk.msra.mxu1 %vm184_vm9, %v242_v13  ;;  %185 = vmatpush.bf16.msk.msra.mxu0 %vm184_vm9, %v242_v13  ;;  %vm194_vm9 = vmpackc.low %vm44_vm8, %vm43_vm6 }
  0x14   :  { %203 = vmatpush.bf16.msk.msra.mxu1 %vm186_vm12, %v242_v13  ;;  %187 = vmatpush.bf16.msk.msra.mxu0 %vm186_vm12, %v242_v13  ;;  %vm131_vm12 = vcmp.ge.s32.totalorder %v256_v1, 4 }
  0x18   :  { %205 = vmatpush.bf16.msk.msra.mxu1 %vm188_vm15, %v242_v13  ;;  %189 = vmatpush.bf16.msk.msra.mxu0 %vm188_vm15, %v242_v13 }
  0x1c   :  { %207 = vmatpush.bf16.msk.msra.mxu1 %vm190_vm3, %v242_v13  ;;  %191 = vmatpush.bf16.msk.msra.mxu0 %vm190_vm3, %v242_v13 }
  0x20   :  { %209 = vmatpush.bf16.msk.msra.mxu1 %vm192_vm7, %v242_v13  ;;  %193 = vmatpush.bf16.msk.msra.mxu0 %vm192_vm7, %v242_v13 }
  0x24   :  { %211 = vmatpush.bf16.msk.msra.mxu1 %vm194_vm9, %v242_v13  ;;  %195 = vmatpush.bf16.msk.msra.mxu0 %vm194_vm9, %v242_v13 }
  0x7d   :  { %v19_v16 = vpop.xlane.xlu0 %18 }
  0x7e   :  { %v20_v17 = vrot.slane %v19_v16, 4 }
  0x80   :  { %v21_v18 = vmax.f32 %v19_v16, %v20_v17 }
  0x82   :  { %v22_v19 = vrot.slane %v21_v18, 2 }
  0x84   :  { %v23_v20 = vmax.f32 %v21_v18, %v22_v19 }
  0x86   :  { %v24_v21 = vrot.slane %v23_v20, 1 }
  0x88   :  { %v25_v22 = vmax.f32 %v23_v20, %v24_v21 }
  0x8a   :  { %212 = vpush %v25_v22 }
  0xbb   :  { %s213_s8 = spop %212 }
  0xbc   :  { %s27_s10 = smax.f32 %s243_s9, %s213_s8 }
  0xbd   :  { %v83_v30 = vstv %s27_s10 }
  0xbe   :  { %v84_v31 = vsub.f32 %v267_v5, %v83_v30 }
  0xc0   :  { %v87_v32 = vsel %vm15_vm0, %v84_v31, -inf }
  0xc1   :  { %v88_v33 = vmul.f32 1.442695, %v87_v32 }
  0xc3   :  { %222 = vpow2.f32 %v88_v33 }
  0xc9   :  { %v223_v34 = vpop.eup %222 }
  0xca   :  { %120 = vadd.xlane.f32.xlu0 %v223_v34  ;;  %v90_v35 = vpack.c.bf16 %v223_v34, %v223_v34 }
  0xcc   :  { %v91_v36 = vunpack.c.l.bf16 %v90_v35  ;;  %115 = vmatmul.bf16.vlgmr.msra.gmra.mxu1 %v90_v35 }
  0xce   :  { %v92_v37 = vsub.f32 %v223_v34, %v91_v36 }
  0xd0   :  { %v93_v38 = vpack.c.bf16 %v92_v37, %v92_v37 }
  0xd2   :  { %102 = vmatmul.bf16.vlgmr.msra.gmra.mxu0 %v93_v38 }
 0x13d   :  { %v121_v39 = vpop.xlane.xlu0 %120 }
 0x13e   :  { %v122_v40 = vrot.slane %v121_v39, 7 }
 0x140   :  { %v124_v41 = vsel %vm123_vm10, %v122_v40, 0.0 }
 0x141   :  { %v125_v42 = vadd.f32 %v124_v41, %v121_v39 }
 0x143   :  { %v126_v43 = vrot.slane %v125_v42, 6 }
 0x145   :  { %v128_v44 = vsel %vm127_vm11, %v126_v43, 0.0 }
 0x146   :  { %v129_v45 = vadd.f32 %v128_v44, %v125_v42 }
 0x148   :  { %v130_v46 = vrot.slane %v129_v45, 4 }
 0x149   :  { %v116_v47 = vpop.f32.mrf.mxu1 }
 0x14a   :  { %v132_v48 = vsel %vm131_vm12, %v130_v46, 0.0 }
 0x14b   :  { %v133_v49 = vadd.f32 %v132_v48, %v129_v45 }
 0x14d   :  { %v134_v51 = vsub.f32 %v133_v49, %v121_v39 }
 0x14f   :  { %v103_v50 = vpop.f32.mrf.mxu0 }
 0x150   :  { %v117_v52 = vadd.f32 %v116_v47, %v103_v50 }
 0x151   :  { %v118_v53 = vpop.f32.mrf.mxu1 }
 0x152   :  { %v135_v54 = vadd.f32 %v134_v51, %v117_v52 }
 0x154   :  { %224 = vlog2.f32 %v135_v54 }
 0x155   :  { %226 = vrcp.f32 %v244_v63 }
 0x157   :  { %v105_v55 = vpop.f32.mrf.mxu0 }
 0x15a   :  { %v225_v56 = vpop.eup %224 }
 0x15b   :  { %v138_v57 = vmul.f32 0.6931472, %v225_v56  ;;  %v227_v0 = vpop.eup %226 }
 0x15c   :  { %v154_v1 = vmul.f32 8.0, %v227_v0  ;;  %vm158_vm13 = vweird.f32 %v227_v0 }
 0x15d   :  { %v139_v58 = vsub.f32 %v84_v31, %v138_v57 }
 0x15e   :  { %v155_v2 = vsub.f32 1.0, %v154_v1 }
 0x15f   :  { %v140_v60 = vsub.f32 0.0, %v139_v58 }
 0x160   :  { %v156_v7 = vmul.f32 %v227_v0, %v155_v2 }
 0x161   :  { %v141_v61 = vmul.f32 %v179_v59, %v140_v60 }
 0x162   :  { %v157_v10 = vadd.f32 %v227_v0, %v156_v7 }
 0x163   :  { %v142_v62 = vsel %vm15_vm0, %v141_v61, 0.0 }
 0x164   :  { %143 = vadd.xlane.f32.xlu1 %v142_v62  ;;  %v159_v13 = vsel %vm158_vm13, %v227_v0, %v157_v10 }
 0x1d7   :  { %v144_v3 = vpop.xlane.xlu1 %143 }
 0x1d8   :  { %v145_v5 = vrot.slane %v144_v3, 4 }
 0x1da   :  { %v146_v6 = vadd.f32 %v145_v5, %v144_v3 }
 0x1dc   :  { %v147_v8 = vrot.slane %v146_v6, 2 }
 0x1de   :  { %v148_v9 = vadd.f32 %v147_v8, %v146_v6 }
 0x1e0   :  { %v149_v11 = vrot.slane %v148_v9, 1 }
 0x1e2   :  { %v150_v12 = vadd.f32 %v149_v11, %v148_v9 }
 0x1e4   :  { %214 = vpush %v150_v12 }
 0x1e5   :  { %216 = vpush %v159_v13 }
 0x215   :  { %s215_s15 = spop %214 }
 0x216   :  { %s217_s16 = spop %216 }
 0x217   :  { %s161_s17 = smul.f32 %s217_s16, %s215_s15 }
 0x219   :  { %163 = sst [smem:[#allocation2]] %s161_s17 }
 0x21a   :  { %172 = dma.smem_to_hbm %s245_s18, 16, %s170_s14, [#allocation3]  }
 0x21b   :  { %240 = dma.done.wait [#allocation3], 16  }
 0x21c   :  { %241 = vsyncadd [#allocation3], 4294967280 }
 0x21d   :  { %177 = sfence }
 0x21e   :  { %178 = vsyncpa [#allocation3], 1 }

</bundles_post_ra>
